<compile_context>
chip_gen: v6e
topology: v6e:2x2x1
jax: 0.10.0
libtpu: 0.0.40
codegen_flags: <defaults>
</compile_context>

<pallas_src>
import jax
import jax.numpy as jnp
from jax.experimental import pallas as pl
from jax.experimental.pallas import tpu as pltpu


def _round_up(x: int, m: int) -> int:
    return ((x + m - 1) // m) * m


def _ang_conv_kernel(w_ref, b_ref, x_ref, o_ref):
    # w_ref : (out_num, K)              grid-invariant, native dtype
    # b_ref : (out_num, 1)              grid-invariant, f32 bias column
    # x_ref : (TB, K, TW)               one (batch-block, hw-tile) input slab
    # o_ref : (TB, an2*out_num, TW)     flattened (angular, channel) output slab
    out_num = w_ref.shape[0]
    an2 = o_ref.shape[1] // out_num
    w = w_ref[...]
    b = b_ref[...]
    for i in range(x_ref.shape[0]):  # TB is small & static -> unrolled
        y = jnp.dot(w, x_ref[i], preferred_element_type=jnp.float32)
        y = (y + b).astype(o_ref.dtype)
        # Fused "repeat over angular views": build the an2-way broadcast once in vregs
        # and emit one lane/sublane-dense full-block store (no masked per-view stores).
        o_ref[i] = jnp.tile(y, (an2, 1))


def _plan_tiling(bs, K, an2, out_num, hw, in_item, out_item):
    """Pick (tb, tw, vmem_limit_bytes).  Generation-aware VMEM budgeting."""
    # Physical VMEM per TensorCore (v5e/v6e: 128 MiB, v7x: 64 MiB).
    vmem_cap = 64 << 20  # conservative (v7x-sized) fallback if the query fails
    try:
        vmem_cap = int(pltpu.get_tpu_info().vmem_capacity_bytes)
    except Exception:  # pragma: no cover - query not available
        pass
    vmem_cap = max(min(vmem_cap, 128 << 20), 32 << 20)

    sub_in = max(32 // in_item, 8)    # sublane packing granularity (f32:8, bf16:16)
    sub_out = max(32 // out_item, 8)
    k_pad = _round_up(K, sub_in)
    o_pad = _round_up(an2 * out_num, sub_out)

    # Grid-invariant buffers (weight + bias, counted double-buffered) + Mosaic
    # internal scratch allowance.
    fixed = (2 * (_round_up(out_num, sub_in) * _round_up(K, 128) * in_item
                  + _round_up(out_num, 8) * 128 * 4)
             + (2 << 20))
    # ~70% of physical VMEM for the double-buffered per-step slabs
    # (v5e/v6e -> ~90 MiB, v7x -> ~45 MiB), minus the fixed buffers.
    avail = max(int(vmem_cap * 0.70) - fixed, 1 << 20)

    # Double-buffered bytes per hw column per batch row (input + output slabs).
    bytes_per_col = 2 * (k_pad * in_item + o_pad * out_item)

    # --- hw tile: largest lane-dense tile fitting the budget -------------------------
    max_cols = max(avail // bytes_per_col, 1)
    if hw <= 128 or hw <= max_cols:
        tw = hw                                   # whole spatial extent in one block
    else:
        tw = max((min(max_cols, hw) // 128) * 128, 128)   # 128-multiple tile
        if hw % 128 == 0:
            while hw % tw != 0:                   # prefer exact divisor (no masked tail)
                tw -= 128
        # else: grid uses cdiv(hw, tw); Pallas masks the partial last block.

    # --- batch tile: amortize the ~0.35 us/step pipeline overhead --------------------
    tb = 1
    if bs > 1:
        out_bytes_per_b = o_pad * tw * out_item
        tb = min(bs, max(1, (1 << 20) // max(out_bytes_per_b, 1)))
        tb = min(tb, max(avail // (tw * bytes_per_col), 1))
        tb = max(min(tb, 8), 1)                   # keep in-kernel unroll small

    # --- megacore: keep >= 2 grid steps on a parallel axis (2 TCs on v7x) ------------
    if pl.cdiv(bs, tb) * pl.cdiv(hw, tw) < 2:
        if bs >= 2:
            tb = max(1, bs // 2)
        elif tw >= 256:
            tw = _round_up((tw + 1) // 2, 128)

    pipe = tb * _round_up(tw, 128) * bytes_per_col
    vmem_limit = pipe + fixed + (4 << 20)
    vmem_limit = min(max(vmem_limit, 32 << 20), int(vmem_cap * 0.9))
    return tb, tw, int(vmem_limit)


def ang_conv(x, weight, bias, an):
    """Forward pass of Ang_conv.  x: (bs*an2, c, h, w) -> (bs*an2, out_num, h, w)."""
    ban2, c, h, w = x.shape
    an2 = an * an
    assert ban2 % an2 == 0, (ban2, an2)
    bs = ban2 // an2
    out_num = weight.shape[0]
    hw = h * w
    K = an2 * c

    # Conv weight (out_num, c, an, an) -> (out_num, an2*c) with K-index = a*c + ci,
    # matching x viewed as (bs, an2*c, h*w).  Tiny host-side glue.
    w2 = jnp.transpose(weight.reshape(out_num, c, an2), (0, 2, 1)).reshape(out_num, K)
    w2 = w2.astype(x.dtype)
    b2 = bias.reshape(out_num, 1).astype(jnp.float32)

    x2 = x.reshape(bs, K, hw)  # zero-copy view: (bs, an2*c, h*w)

    out_dtype = x.dtype
    in_item = jnp.dtype(x.dtype).itemsize
    out_item = jnp.dtype(out_dtype).itemsize
    tb, tw, vmem_limit = _plan_tiling(bs, K, an2, out_num, hw, in_item, out_item)
    n_b = pl.cdiv(bs, tb)
    n_hw = pl.cdiv(hw, tw)

    out = pl.pallas_call(
        _ang_conv_kernel,
        out_shape=jax.ShapeDtypeStruct((bs, an2 * out_num, hw), out_dtype),
        grid_spec=pltpu.PrefetchScalarGridSpec(
            num_scalar_prefetch=0,
            grid=(n_b, n_hw),
            in_specs=[
                pl.BlockSpec((out_num, K), lambda b, t: (0, 0)),
                pl.BlockSpec((out_num, 1), lambda b, t: (0, 0)),
                pl.BlockSpec((tb, K, tw), lambda b, t: (b, 0, t)),
            ],
            out_specs=pl.BlockSpec((tb, an2 * out_num, tw), lambda b, t: (b, 0, t)),
        ),
        compiler_params=pltpu.CompilerParams(
            dimension_semantics=("parallel", "parallel"),
            vmem_limit_bytes=vmem_limit,
        ),
    )(w2, b2, x2)

    # (bs, an2*out_num, hw) == (bs, an2, out_num, hw) row-major -> zero-copy reshape.
    return out.reshape(bs * an2, out_num, h, w)


def ang_conv_ref(x, weight, bias, an):
    """Pure-JAX reference that mirrors the PyTorch forward step by step."""
    ban2, c, h, w = x.shape
    an2 = an * an
    bs = ban2 // an2
    out_num = weight.shape[0]
    xr = x.reshape(bs, an2, c, h * w)
    xr = jnp.transpose(xr, (0, 3, 2, 1)).reshape(bs * h * w, c * an2)
    y = xr @ weight.reshape(out_num, c * an * an).T + bias
    y = y.reshape(bs, h * w, out_num)
    out = jnp.broadcast_to(y[:, None], (bs, an2, h * w, out_num))
    out = jnp.transpose(out, (0, 1, 3, 2)).reshape(bs * an2, out_num, h, w)
    return out


if __name__ == "__main__":
    key = jax.random.PRNGKey(0)
    k1, k2, k3, k4, k5, k6 = jax.random.split(key, 6)

    # Test 1: bs=2, an=2 (an2=4), c=4, out_num=8, 16x16 spatial.
    bs, an, c, out_num, h, w = 2, 2, 4, 8, 16, 16
    an2 = an * an
    x = jax.random.normal(k1, (bs * an2, c, h, w), dtype=jnp.float32)
    weight = jax.random.normal(k2, (out_num, c, an, an), dtype=jnp.float32) * 0.1
    bias = jax.random.normal(k3, (out_num,), dtype=jnp.float32) * 0.1
    y = ang_conv(x, weight, bias, an)
    jax.block_until_ready(y)
    assert y.shape == (bs * an2, out_num, h, w), y.shape
    err = jnp.max(jnp.abs(y - ang_conv_ref(x, weight, bias, an)))
    assert err < 1e-4, err

    # Test 2: bs=1 and h*w not a multiple of 128 (full-extent lane block path).
    bs, an, c, out_num, h, w = 1, 2, 3, 8, 13, 11
    an2 = an * an
    x = jax.random.normal(k4, (bs * an2, c, h, w), dtype=jnp.float32)
    weight = jax.random.normal(k5, (out_num, c, an, an), dtype=jnp.float32) * 0.1
    bias = jax.random.normal(k6, (out_num,), dtype=jnp.float32) * 0.1
    y = ang_conv(x, weight, bias, an)
    jax.block_until_ready(y)
    assert y.shape == (bs * an2, out_num, h, w), y.shape
    err = jnp.max(jnp.abs(y - ang_conv_ref(x, weight, bias, an)))
    assert err < 1e-4, err

    print("KERNEL_OK")
</pallas_src>

<mosaic_0001>
module attributes {stable_mosaic.version = 11 : i64} {
  func.func @_ang_conv_kernel(%arg0: i32, %arg1: i32, %arg2: memref<8x16xf32, #tpu.memory_space<vmem>>, %arg3: memref<8x1xf32, #tpu.memory_space<vmem>>, %arg4: memref<1x16x256xf32, #tpu.memory_space<vmem>>, %arg5: memref<1x32x256xf32, #tpu.memory_space<vmem>>) attributes {dimension_semantics = [#tpu.dimension_semantics<parallel>, #tpu.dimension_semantics<parallel>], iteration_bounds = array<i64: 2, 1>, scalar_prefetch = 0 : i64, scratch_operands = 0 : i64, tpu.core_type = #tpu.core_type<tc>, window_params = [{pipeline_mode = #tpu.pipeline_mode<synchronous>, transform_indices = @transform_0, window_bounds = array<i64: 8, 16>}, {pipeline_mode = #tpu.pipeline_mode<synchronous>, transform_indices = @transform_1, window_bounds = array<i64: 8, 1>}, {transform_indices = @transform_2, window_bounds = array<i64: 1, 16, 256>}, {transform_indices = @transform_3, window_bounds = array<i64: 1, 32, 256>}]} {
    %c0 = arith.constant 0 : index
    %c0_0 = arith.constant 0 : index
    %0 = vector.load %arg2[%c0, %c0_0] : memref<8x16xf32, #tpu.memory_space<vmem>>, vector<8x16xf32>
    %c0_1 = arith.constant 0 : index
    %c0_2 = arith.constant 0 : index
    %1 = vector.load %arg3[%c0_1, %c0_2] : memref<8x1xf32, #tpu.memory_space<vmem>>, vector<8x1xf32>
    %c0_3 = arith.constant 0 : index
    %c0_4 = arith.constant 0 : index
    %c0_5 = arith.constant 0 : index
    %2 = vector.load %arg4[%c0_3, %c0_4, %c0_5] : memref<1x16x256xf32, #tpu.memory_space<vmem>>, vector<1x16x256xf32>
    %3 = vector.shape_cast %2 : vector<1x16x256xf32> to vector<16x256xf32>
    %cst = arith.constant dense<0.000000e+00> : vector<8x256xf32>
    %4 = tpu.matmul %0, %3, %cst {dimension_numbers = #tpu.dot_dimension_numbers<[1], [0], [0], [1], [0, 0, 1, 1], [], []>} : vector<8x16xf32>, vector<16x256xf32>, vector<8x256xf32> -> vector<8x256xf32>
    %5 = vector.broadcast %1 : vector<8x1xf32> to vector<8x256xf32>
    %6 = arith.addf %4, %5 : vector<8x256xf32>
    %7 = tpu.concatenate %6, %6, %6, %6 in 0 : vector<8x256xf32>, vector<8x256xf32>, vector<8x256xf32>, vector<8x256xf32> -> vector<32x256xf32>
    %c0_6 = arith.constant 0 : index
    %c0_7 = arith.constant 0 : index
    %c0_8 = arith.constant 0 : index
    %8 = vector.load %arg5[%c0_6, %c0_7, %c0_8] : memref<1x32x256xf32, #tpu.memory_space<vmem>>, vector<1x32x256xf32>
    %9 = vector.shape_cast %8 : vector<1x32x256xf32> to vector<32x256xf32>
    %10 = vector.shape_cast %7 : vector<32x256xf32> to vector<1x32x256xf32>
    tpu.vector_store %arg5[%c0_6, %c0_7, %c0_8], %10 {strides = array<i32>} : memref<1x32x256xf32, #tpu.memory_space<vmem>>, vector<1x32x256xf32>,
    return
  }
  func.func @transform_0(%arg0: i32, %arg1: i32) -> (i32, i32) {
    %c0_i32 = arith.constant 0 : i32
    %c0_i32_0 = arith.constant 0 : i32
    %c0_i32_1 = arith.constant 0 : i32
    return %c0_i32, %c0_i32_0 : i32, i32
  }
  func.func @transform_1(%arg0: i32, %arg1: i32) -> (i32, i32) {
    %c0_i32 = arith.constant 0 : i32
    %c0_i32_0 = arith.constant 0 : i32
    %c0_i32_1 = arith.constant 0 : i32
    return %c0_i32, %c0_i32_0 : i32, i32
  }
  func.func @transform_2(%arg0: i32, %arg1: i32) -> (i32, i32, i32) {
    %c0_i32 = arith.constant 0 : i32
    %c0_i32_0 = arith.constant 0 : i32
    return %arg0, %c0_i32, %arg1 : i32, i32, i32
  }
  func.func @transform_3(%arg0: i32, %arg1: i32) -> (i32, i32, i32) {
    %c0_i32 = arith.constant 0 : i32
    %c0_i32_0 = arith.constant 0 : i32
    return %arg0, %c0_i32, %arg1 : i32, i32, i32
  }
}

</mosaic_0001>

<bundles_post_ra>
// kernel: tpu_custom_call.1
= control target key start
LH: loop header
LB: loop body
LE: loop exit
PB: predicated region body
PF: predicated region fallthrough
CT: control target
= control target key end

     0   :  { %8 = vsyncpa [#allocation3], 0  ;;  %s784_s0 = inlined_call_operand.vmem [shape: f32[8,16], index: 0, kind: input, shape index: {}]   ;;  %s785_s1 = inlined_call_operand.vmem [shape: f32[8,1], index: 1, kind: input, shape index: {}]   ;;  %s786_s2 = inlined_call_operand.hbm [shape: f32[2,16,256], index: 2, kind: input, shape index: {}]   ;;  %s787_s3 = inlined_call_operand.hbm [shape: f32[2,32,256], index: 3, kind: output, shape index: {}]  }
   0x1   :  { %10 = vsyncpa [#allocation3 + $0x1], 0 }
   0x2   :  { %11 = vsyncpa [#allocation4], 0 }
   0x3   :  { %13 = vsyncpa [#allocation4 + $0x1], 0  ;;  %s631_s12 = smov 0   ;;  %s633_s13 = smov 0  }
   0x4   :  { %s635_s14 = smov 0   ;;  %s637_s15 = smov 0  }
   0x5   :  { %s639_s16 = smov 0   ;;  %s641_s17 = smov 0  }
   0x6 LB: > { %s406_s18 = sadd.s32 4294967295, %s601_s17   ;;  %s407_s19 = sadd.s32 4294967294, %s601_s17   ;;  %s601_s17 = sphi %s641_s17, %s19_s17   ;;  %s597_s16 = sphi %s639_s16, %s798_s16   ;;  %s593_s15 = sphi %s637_s15, %s797_s15   ;;  %s589_s14 = sphi %s635_s14, %s796_s14   ;;  %s585_s13 = sphi %s633_s13, %s795_s13   ;;  %s581_s12 = sphi %s631_s12, %s794_s12  }
   0x7   : > { %s31_s20 = sadd.s32 1, %s597_s16  ;;  %s82_s21 = sadd.s32 1, %s589_s14 }
   0x8   : > { %p33_p0 = scmp.ge.s32.totalorder %s31_s20, 2  ;;  %p89_p1 = scmp.ne.s32.totalorder %s589_s14, %s585_s13 }
   0x9   : > { %p90_p2 = scmp.eq.s32.totalorder %s601_s17, 0  ;;  %p95_p3 = scmp.ne.s32.totalorder %s585_s13, %s581_s12 }
   0xa   : > { %s800_s20 = smov (%p33_p0, %s31_s20), 0  ;;  %p96_p5 = scmp.eq.s32.totalorder %s406_s18, 0 }
   0xb   : > { %p672_p4 = por %p90_p2, %p89_p1  ;;  %s77_s23 = ssub.s32 %s597_s16, %s800_s20 }
   0xc   : > { %p121_p6 = scmp.eq.s32.totalorder %s406_s18, 1  ;;  %p80_p7 = scmp.eq.s32.totalorder %s77_s23, 0 }
   0xd   : > { %p678_p8 = por %p96_p5, %p95_p3  ;;  %p127_p10 = scmp.eq.s32.totalorder %s407_s19, 1 }
   0xe   : > { %p682_p9 = por %p121_p6, %p89_p1  ;;  %p436_p13 = scmp.lt.s32.totalorder %s601_s17, 2 }
   0xf   : > { %s687_s26 = scalar_select %p80_p7, %s589_s14, %s82_s21  }
  0x10   : > { %p689_p11 = por %p127_p10, %p95_p3  ;;  %s153_s28 = sand.u32 1, %s589_s14  }
  0x11   : > { %s410_s29 = sshll.u32 %s153_s28, 5  ;;  %s422_s30 = sshll.u32 %s597_s16, 9 }
  0x12   : > { %s165_s6 = scalar_lea.hbm %s786_s2, %s422_s30  ;;  %s157_s7 = scalar_lea.vmem [#allocation2], %s410_s29 }
  0x13   : > { %s166_s8 = sshll.u32 %s157_s7, 4  ;;  %p702_p0 = pnand %p436_p13, %p672_p4  ;;  %s167_s8 = int_to_ptr.vmem [resolvable:$true] %s166_s8 }
  0x14   : > { %p413_p1 = scmp.ge.s32.totalorder %s601_s17, 1  ;;  %s154_s10 = scalar_lea.sflag [#allocation3], %s153_s28 }
  0x15   : > { %p495_p2 = pneg %p702_p0  ;;  %s506_s11 = scalar_lea.vmem %s167_s8, 512 }
  0x16   : > { %p507_p3 = scmp.ne.s32.totalorder %s167_s8, %s506_s11  ;;  %s603_s18 = smov [#allocation2]  }
  0x17   : > { %s511_s19 = sshll.u32 %s603_s18, 4  ;;  %s512_s19 = int_to_ptr.vmem [resolvable:$false] %s511_s19 }
  0x18   : > { %p509_p5 = pnand %p507_p3, %p495_p2  ;;  %s513_s21 = scalar_lea.vmem %s512_s19, 1024 }
  0x19   : > { %p514_p7 = scmp.lt.s32.totalorder %s167_s8, %s512_s19  ;;  %p515_p10 = scmp.lt.s32.totalorder %s513_s21, %s506_s11 }
  0x1a   : > { %p510_p6 = pneg %p509_p5 }
  0x1b   : > { %p516_p12 = por %p515_p10, %p514_p7 }
  0x1d   : > { %p517_p4 = pnand %p516_p12, %p510_p6 }
  0x1f   : > { %520 = shalt.err (!%p517_p4)
}
  0x20   : > { %s604_s22 = smov 256   ;;  %s605_s23 = smov 16  }
  0x21   : > { %431 = dma.hbm_to_vmem [thread:$0]  (!%p702_p0), %s165_s6, 512, %s167_s8, %s154_s10, %s604_s22, %s604_s22, %s605_s23  }
  0x22   : > { %p174_p13 = scmp.lt.s32.totalorder %s601_s17, 3 }
  0x24   : > { %p175_p2 = pnand %p413_p1, %p174_p13 }
  0x25   : > { %s715_s28 = sand.u32 (!%p175_p2), 1, %s585_s13  }
  0x26   : > { %178 = sbr.rel (%p175_p2) target bundleno = 262 (0x106), region = 32  ;;  %s414_s29 = sshll.u32 (!%p175_p2), %s715_s28, 5 }
  0x27   : > { %s181_s30 = scalar_lea.sflag (!%p175_p2), [#allocation3], %s715_s28  ;;  %s184_s4 = scalar_lea.vmem (!%p175_p2), [#allocation2], %s414_s29 }
  0x2b   : > { %572 = dma.done.wait (%p678_p8), %s181_s30, 512  }
  0x2c   : > { %574 = vsyncadd (%p678_p8), %s181_s30, 4294966784  ;;  %v606_v0 = vmov 0.0   ;;  %v607_v1 = vmov 0   ;;  %v214_v2 = vld [vmem:[%s184_s4 + $0x18] sm:$0xff]  ;;  %v213_v3 = vld [vmem:[%s184_s4 + $0x10] sm:$0xff]  ;;  %vm220_vm0 = vcmask 130048  }
  0x2d   : > { %288 = vmatprep.mubr.f32.mxu0 %v606_v0  ;;  %492 = vset.pattern.permute.xlu0 %v607_v1  ;;  %v212_v4 = vld [vmem:[%s184_s4 + $0x8] sm:$0xff]  ;;  %v211_v5 = vld [vmem:[%s184_s4] sm:$0xff]  ;;  %s415_s24 = sshll.u32 %s715_s28, 6  ;;  %s423_s9 = sshll.u32 %s593_s15, 10 }
  0x2e   : > { %252 = vmatprep.subr.mxu0 %v214_v2  ;;  %v210_v6 = vld [vmem:[%s785_s1] sm:$0xff]  ;;  %s206_s10 = scalar_lea.vmem [#allocation5], %s415_s24  ;;  %s734_s21 = scalar_lea.hbm %s787_s3, %s423_s9 }
  0x2f   : > { %253 = vmatpush1.msra.mxu0 %v213_v3  ;;  %v209_v7 = vld [vmem:[%s784_s0] sm:$0xff]  ;;  %217 = vperm.xlu0 %492, %v210_v6   ;;  %s319_s11 = sshll.u32 %s206_s10, 4  ;;  %s304_s15 = scalar_lea.sflag [#allocation4], %s715_s28  ;;  %s736_s11 = int_to_ptr.vmem [resolvable:$true] %s319_s11 }
  0x30   : > { %254 = vmatprep.subr.mxu0 %v212_v4  ;;  %s521_s22 = scalar_lea.vmem %s736_s11, 1024  ;;  %s608_s23 = smov [#allocation5]  }
  0x31   : > { %255 = vmatpush1.msra.mxu0 %v211_v5  ;;  %p522_p8 = scmp.ne.s32.totalorder %s736_s11, %s521_s22  ;;  %s525_s29 = sshll.u32 %s608_s23, 4  ;;  %s526_s29 = int_to_ptr.vmem [resolvable:$false] %s525_s29 }
  0x32   : > { %416 = vmatmul.mubr.msk.f32.vlgmr.msra.gmra.mxu0 %vm220_vm0, %v209_v7  ;;  %s527_s30 = scalar_lea.vmem %s526_s29, 2048  ;;  %p528_p1 = scmp.lt.s32.totalorder %s736_s11, %s526_s29 }
  0x33   : > { %p523_p12 = pnand %p522_p8, %p682_p9  ;;  %p529_p3 = scmp.lt.s32.totalorder %s527_s30, %s521_s22 }
  0x35   : > { %p524_p0 = pneg %p523_p12  ;;  %p530_p5 = por %p529_p3, %p528_p1 }
  0x37   : > { %p531_p6 = pnand %p530_p5, %p524_p0 }
  0xaa   : > { %v218_v8 = vpop.permute.xlu0 %217 }
  0xf2   : > { %v290_v9 = vpop.f32.mrf.mxu0 }
  0xf3   : > { %v291_v10 = vadd.f32 %v290_v9, %v218_v8 }
  0xf4   : > { %v292_v11 = vpop.f32.mrf.mxu0 }
  0xf5   : > { %295 = vst [vmem:[%s206_s10] sm:$0xff] %v291_v10  ;;  %297 = vst [vmem:[%s206_s10 + $0x10] sm:$0xff] %v291_v10  ;;  %v293_v12 = vadd.f32 %v292_v11, %v218_v8 }
  0xf6   : > { %299 = vst [vmem:[%s206_s10 + $0x20] sm:$0xff] %v291_v10  ;;  %301 = vst [vmem:[%s206_s10 + $0x30] sm:$0xff] %v291_v10 }
  0xf7   : > { %296 = vst [vmem:[%s206_s10 + $0x8] sm:$0xff] %v293_v12  ;;  %298 = vst [vmem:[%s206_s10 + $0x18] sm:$0xff] %v293_v12 }
  0xf8   : > { %300 = vst [vmem:[%s206_s10 + $0x28] sm:$0xff] %v293_v12  ;;  %302 = vst [vmem:[%s206_s10 + $0x38] sm:$0xff] %v293_v12 }
  0xf9   : > { %534 = shalt.err (!%p531_p6)
}
  0xfa   : > { %s535_s4 = scalar_lea.hbm %s734_s21, 1024  ;;  %s539_s7 = scalar_lea.hbm %s787_s3, 2048 }
  0xfb   : > { %p536_p7 = scmp.ne.s32.totalorder %s734_s21, %s535_s4  ;;  %p540_p13 = scmp.lt.s32.totalorder %s734_s21, %s787_s3 }
  0xfc   : > { %p541_p2 = scmp.lt.s32.totalorder %s539_s7, %s535_s4 }
  0xfd   : > { %p537_p10 = pnand %p536_p7, %p682_p9 }
  0xfe   : > { %p542_p8 = por %p541_p2, %p540_p13 }
  0xff   : > { %p538_p4 = pneg %p537_p10 }
 0x101   : > { %p543_p12 = pnand %p542_p8, %p538_p4 }
 0x103   : > { %546 = shalt.err (!%p543_p12)
}
 0x104   : > { %s609_s9 = smov 256   ;;  %s610_s10 = smov 16  }
 0x105   : > { %426 = dma.vmem_to_hbm [thread:$0]  (%p682_p9), %s736_s11, 1024, %s734_s21, %s304_s15, %s609_s9, %s609_s9, %s610_s10  }
 0x106 PF: > { %s334_s18 = sand.u32 1, %s581_s12   ;;  %p793_p0 = scmp.ge.s32.totalorder %s601_s17, 2 }
 0x107   : > { %s335_s19 = scalar_lea.sflag [#allocation4], %s334_s18 }
 0x108   : > { %p433_p1 = pnand %p793_p0, %p689_p11 }
 0x10a   : > { %p434_p3 = pneg %p433_p1 }
 0x10c   : > { %576 = dma.done.wait (%p434_p3), %s335_s19, 1024  }
 0x10d   : > { %578 = vsyncadd (%p434_p3), %s335_s19, 4294966272  ;;  %s19_s17 = sadd.s32 1, %s601_s17   ;;  %s794_s12 = smov %s585_s13 }
 0x10e   : > { %p16_p5 = scmp.ge.s32.totalorder %s19_s17, 4   ;;  %s795_s13 = smov %s589_s14 }
 0x10f   : > { %s796_s14 = smov %s687_s26  ;;  %s797_s15 = smov %s597_s16 }
 0x110   : > { %s798_s16 = smov %s800_s20  ;;  %18 = sbr.rel (!%p16_p5) target bundleno = 6 (0x6), region = 77 }
 0x115   :  { %340 = vsyncpa [#allocation3], 1 }
 0x116   :  { %342 = vsyncpa [#allocation3 + $0x1], 1 }
 0x117   :  { %343 = vsyncpa [#allocation4], 1 }
 0x118   :  { %345 = vsyncpa [#allocation4 + $0x1], 1 }

</bundles_post_ra>
